<compile_context>
chip_gen: v5e
topology: v5e:2x2
jax: 0.10.0
libtpu: 0.0.40
codegen_flags: <defaults>
</compile_context>

<pallas_src>
import functools

import jax
import jax.numpy as jnp
from jax.experimental import pallas as pl
from jax.experimental.pallas import tpu as pltpu

# Small shapes consistent with a transformer-style use of this module:
# (batch, seq, hidden) with parameters_shape = (hidden,).
BATCH = 2
SEQ = 8
HIDDEN = 32
EPS = 1e-5

_LANES = 128
_VMEM_LIMIT_BYTES = 32 * 1024 * 1024   # >= scoped default on v5e/v6e/v7x, < v7x physical 64 MiB
_VMEM_BLOCK_BUDGET = 20 * 1024 * 1024  # headroom for gamma/beta buffers & compiler internals


def _layernorm_kernel(x_ref, gamma_ref, beta_ref, out_ref, *, eps, feat, groups):
    """x_ref: (TR, lanes) row tile, lanes = groups * feat.

    When groups > 1, each 128-lane physical row holds `groups` logical rows of
    `feat` features each; mean/var are reduced per feat-wide lane segment with
    exact f32 masked reductions (no MXU, no lane slicing).
    """
    x = x_ref[...].astype(jnp.float32)                       # (TR, lanes)

    if groups == 1:
        mean = jnp.mean(x, axis=-1, keepdims=True)           # (TR, 1)
        centered = x - mean
        var = jnp.mean(centered * centered, axis=-1, keepdims=True)
    else:
        inv_f = 1.0 / feat
        lane = jax.lax.broadcasted_iota(jnp.int32, x.shape, dimension=1)
        masks = [(lane >= g * feat) & (lane < (g + 1) * feat) for g in range(groups)]

        def seg_mean(v):
            out = jnp.zeros_like(v)
            for g in range(groups):
                # Masked full-width lane reduction: exact, lane-dense, no relayouts.
                m = jnp.sum(jnp.where(masks[g], v, 0.0), axis=-1, keepdims=True) * inv_f
                out = out + jnp.where(masks[g], m, 0.0)
            return out

        mean = seg_mean(x)                                    # (TR, lanes)
        centered = x - mean
        var = seg_mean(centered * centered)

    inv_std = jax.lax.rsqrt(var + eps)                        # EUP rsqrt
    y = centered * inv_std
    out = gamma_ref[...].astype(jnp.float32) * y + beta_ref[...].astype(jnp.float32)
    out_ref[...] = out.astype(out_ref.dtype)


def _sublane_pack(dtype) -> int:
    """Sub-32-bit dtypes pack along sublanes: 8 for f32, 16 for bf16, 32 for int8/fp8."""
    return max(8, 32 // jnp.dtype(dtype).itemsize)


def _choose_row_tile(rows: int, lanes: int, dtype) -> int:
    """Largest row tile whose pipelined buffers + f32 temps fit the VMEM budget."""
    itemsize = jnp.dtype(dtype).itemsize
    pack = _sublane_pack(dtype)
    # 2 input buffers + 2 output buffers (native dtype) + ~3 f32 temporaries per element.
    bytes_per_row = lanes * (4 * itemsize + 3 * 4)
    tr = max(1, _VMEM_BLOCK_BUDGET // bytes_per_row)
    if tr < rows:
        tr = max(pack, (tr // pack) * pack)
    if tr >= rows:
        if rows >= 2 * pack:
            # Whole problem fits in one block: still split into >= 2 grid steps
            # so both v7x TensorCores get work on the "parallel" axis.
            half = pl.cdiv(rows, 2)
            tr = ((half + pack - 1) // pack) * pack
        else:
            tr = rows  # single full-extent block (always a legal BlockSpec)
    return tr


def layer_normalization(x, gamma, beta, parameters_shape, eps=1e-5):
    """Pallas LayerNorm over the last len(parameters_shape) dims of x."""
    n_norm_dims = len(parameters_shape)
    assert x.shape[-n_norm_dims:] == tuple(parameters_shape)

    feat = 1
    for d in parameters_shape:
        feat *= d
    rows = 1
    for d in x.shape[:-n_norm_dims]:
        rows *= d

    # Lane-dense packing for small feature counts: put P = 128 // feat logical
    # rows in each 128-lane physical row (row-major reshape => no data movement).
    groups = 1
    if feat < _LANES and _LANES % feat == 0 and rows % (_LANES // feat) == 0:
        groups = _LANES // feat
    # TODO(synk): feat < 128 that does not divide 128 falls back to the
    # lane-sparse (masked-store) path; zero-padding feat would change the reduction.

    lanes = groups * feat
    packed_rows = rows // groups

    x2d = x.reshape(packed_rows, lanes)
    gamma_row = gamma.reshape(1, feat)
    beta_row = beta.reshape(1, feat)
    if groups > 1:
        gamma_row = jnp.tile(gamma_row, (1, groups))
        beta_row = jnp.tile(beta_row, (1, groups))

    tr = _choose_row_tile(packed_rows, lanes, x.dtype)
    grid = (pl.cdiv(packed_rows, tr),)

    kernel = functools.partial(_layernorm_kernel, eps=eps, feat=feat, groups=groups)

    itemsize = jnp.dtype(x.dtype).itemsize
    cost = pl.CostEstimate(
        flops=8 * rows * feat,
        transcendentals=rows,
        bytes_accessed=2 * rows * feat * itemsize
        + 2 * feat * jnp.dtype(gamma.dtype).itemsize,
    )

    out2d = pl.pallas_call(
        kernel,
        out_shape=jax.ShapeDtypeStruct((packed_rows, lanes), x.dtype),
        grid_spec=pltpu.PrefetchScalarGridSpec(
            num_scalar_prefetch=0,
            grid=grid,
            in_specs=[
                pl.BlockSpec((tr, lanes), lambda i: (i, 0)),   # x row tile
                pl.BlockSpec((1, lanes), lambda i: (0, 0)),    # gamma
                pl.BlockSpec((1, lanes), lambda i: (0, 0)),    # beta
            ],
            out_specs=pl.BlockSpec((tr, lanes), lambda i: (i, 0)),
        ),
        compiler_params=pltpu.CompilerParams(
            dimension_semantics=("parallel",),
            vmem_limit_bytes=_VMEM_LIMIT_BYTES,
        ),
        cost_estimate=cost,
    )(x2d, gamma_row, beta_row)

    return out2d.reshape(x.shape)


def reference(x, gamma, beta, parameters_shape, eps=1e-5):
    """Pure-JAX port of the PyTorch forward for verification."""
    dims = tuple(range(-len(parameters_shape), 0))
    mean = jnp.mean(x, axis=dims, keepdims=True)
    var = jnp.mean((x - mean) ** 2, axis=dims, keepdims=True)
    std = jnp.sqrt(var + eps)
    y = (x - mean) / std
    return gamma * y + beta


if __name__ == "__main__":
    key = jax.random.PRNGKey(0)
    kx, kg, kb = jax.random.split(key, 3)

    parameters_shape = (HIDDEN,)
    x = jax.random.normal(kx, (BATCH, SEQ, HIDDEN), jnp.float32)
    # Non-trivial gamma/beta so the affine part is actually exercised.
    gamma = 1.0 + 0.1 * jax.random.normal(kg, parameters_shape, jnp.float32)
    beta = 0.1 * jax.random.normal(kb, parameters_shape, jnp.float32)

    out = layer_normalization(x, gamma, beta, parameters_shape, eps=EPS)
    out = jax.block_until_ready(out)

    ref = reference(x, gamma, beta, parameters_shape, eps=EPS)
    assert out.shape == x.shape
    err = jnp.max(jnp.abs(out - ref))
    assert jnp.allclose(out, ref, atol=1e-5, rtol=1e-5), f"max abs err {err}"
    print("KERNEL_OK")
</pallas_src>

<mosaic_0001>
module attributes {stable_mosaic.version = 11 : i64} {
  func.func @_layernorm_kernel(%arg0: i32, %arg1: memref<4x128xf32, #tpu.memory_space<vmem>>, %arg2: memref<1x128xf32, #tpu.memory_space<vmem>>, %arg3: memref<1x128xf32, #tpu.memory_space<vmem>>, %arg4: memref<4x128xf32, #tpu.memory_space<vmem>>) attributes {dimension_semantics = [#tpu.dimension_semantics<parallel>], iteration_bounds = array<i64: 1>, scalar_prefetch = 0 : i64, scratch_operands = 0 : i64, tpu.core_type = #tpu.core_type<tc>, window_params = [{transform_indices = @transform_0, window_bounds = array<i64: 4, 128>}, {pipeline_mode = #tpu.pipeline_mode<synchronous>, transform_indices = @transform_1, window_bounds = array<i64: 1, 128>}, {pipeline_mode = #tpu.pipeline_mode<synchronous>, transform_indices = @transform_2, window_bounds = array<i64: 1, 128>}, {transform_indices = @transform_3, window_bounds = array<i64: 4, 128>}]} {
    %c0 = arith.constant 0 : index
    %c0_0 = arith.constant 0 : index
    %0 = vector.load %arg1[%c0, %c0_0] : memref<4x128xf32, #tpu.memory_space<vmem>>, vector<4x128xf32>
    %1 = tpu.iota {dimensions = array<i32: 1>} : vector<4x128xi32>
    %c0_i32 = arith.constant 0 : i32
    %2 = vector.broadcast %c0_i32 : i32 to vector<4x128xi32>
    %3 = arith.cmpi sge, %1, %2 : vector<4x128xi32>
    %c32_i32 = arith.constant 32 : i32
    %4 = vector.broadcast %c32_i32 : i32 to vector<4x128xi32>
    %5 = arith.cmpi slt, %1, %4 : vector<4x128xi32>
    %6 = arith.andi %3, %5 : vector<4x128xi1>
    %c32_i32_1 = arith.constant 32 : i32
    %7 = vector.broadcast %c32_i32_1 : i32 to vector<4x128xi32>
    %8 = arith.cmpi sge, %1, %7 : vector<4x128xi32>
    %c64_i32 = arith.constant 64 : i32
    %9 = vector.broadcast %c64_i32 : i32 to vector<4x128xi32>
    %10 = arith.cmpi slt, %1, %9 : vector<4x128xi32>
    %11 = arith.andi %8, %10 : vector<4x128xi1>
    %c64_i32_2 = arith.constant 64 : i32
    %12 = vector.broadcast %c64_i32_2 : i32 to vector<4x128xi32>
    %13 = arith.cmpi sge, %1, %12 : vector<4x128xi32>
    %c96_i32 = arith.constant 96 : i32
    %14 = vector.broadcast %c96_i32 : i32 to vector<4x128xi32>
    %15 = arith.cmpi slt, %1, %14 : vector<4x128xi32>
    %16 = arith.andi %13, %15 : vector<4x128xi1>
    %c96_i32_3 = arith.constant 96 : i32
    %17 = vector.broadcast %c96_i32_3 : i32 to vector<4x128xi32>
    %18 = arith.cmpi sge, %1, %17 : vector<4x128xi32>
    %c128_i32 = arith.constant 128 : i32
    %19 = vector.broadcast %c128_i32 : i32 to vector<4x128xi32>
    %20 = arith.cmpi slt, %1, %19 : vector<4x128xi32>
    %21 = arith.andi %18, %20 : vector<4x128xi1>
    %cst = arith.constant 0.000000e+00 : f32
    %22 = vector.broadcast %cst : f32 to vector<4x128xf32>
    %cst_4 = arith.constant 0.000000e+00 : f32
    %23 = vector.broadcast %cst_4 : f32 to vector<4x128xf32>
    %24 = arith.select %6, %0, %23 : vector<4x128xi1>, vector<4x128xf32>
    %cst_5 = arith.constant dense<0.000000e+00> : vector<4xf32>
    %25 = vector.multi_reduction <add>, %24, %cst_5 [1] : vector<4x128xf32> to vector<4xf32>
    %26 = vector.shape_cast %25 : vector<4xf32> to vector<4x1xf32>
    %cst_6 = arith.constant 3.125000e-02 : f32
    %27 = vector.broadcast %cst_6 : f32 to vector<4x1xf32>
    %28 = arith.mulf %26, %27 : vector<4x1xf32>
    %cst_7 = arith.constant 0.000000e+00 : f32
    %29 = vector.shape_cast %28 : vector<4x1xf32> to vector<4x1xf32>
    %30 = vector.broadcast %29 : vector<4x1xf32> to vector<4x128xf32>
    %31 = vector.broadcast %cst_7 : f32 to vector<4x128xf32>
    %32 = arith.select %6, %30, %31 : vector<4x128xi1>, vector<4x128xf32>
    %33 = arith.addf %22, %32 : vector<4x128xf32>
    %cst_8 = arith.constant 0.000000e+00 : f32
    %34 = vector.broadcast %cst_8 : f32 to vector<4x128xf32>
    %35 = arith.select %11, %0, %34 : vector<4x128xi1>, vector<4x128xf32>
    %cst_9 = arith.constant dense<0.000000e+00> : vector<4xf32>
    %36 = vector.multi_reduction <add>, %35, %cst_9 [1] : vector<4x128xf32> to vector<4xf32>
    %37 = vector.shape_cast %36 : vector<4xf32> to vector<4x1xf32>
    %cst_10 = arith.constant 3.125000e-02 : f32
    %38 = vector.broadcast %cst_10 : f32 to vector<4x1xf32>
    %39 = arith.mulf %37, %38 : vector<4x1xf32>
    %cst_11 = arith.constant 0.000000e+00 : f32
    %40 = vector.shape_cast %39 : vector<4x1xf32> to vector<4x1xf32>
    %41 = vector.broadcast %40 : vector<4x1xf32> to vector<4x128xf32>
    %42 = vector.broadcast %cst_11 : f32 to vector<4x128xf32>
    %43 = arith.select %11, %41, %42 : vector<4x128xi1>, vector<4x128xf32>
    %44 = arith.addf %33, %43 : vector<4x128xf32>
    %cst_12 = arith.constant 0.000000e+00 : f32
    %45 = vector.broadcast %cst_12 : f32 to vector<4x128xf32>
    %46 = arith.select %16, %0, %45 : vector<4x128xi1>, vector<4x128xf32>
    %cst_13 = arith.constant dense<0.000000e+00> : vector<4xf32>
    %47 = vector.multi_reduction <add>, %46, %cst_13 [1] : vector<4x128xf32> to vector<4xf32>
    %48 = vector.shape_cast %47 : vector<4xf32> to vector<4x1xf32>
    %cst_14 = arith.constant 3.125000e-02 : f32
    %49 = vector.broadcast %cst_14 : f32 to vector<4x1xf32>
    %50 = arith.mulf %48, %49 : vector<4x1xf32>
    %cst_15 = arith.constant 0.000000e+00 : f32
    %51 = vector.shape_cast %50 : vector<4x1xf32> to vector<4x1xf32>
    %52 = vector.broadcast %51 : vector<4x1xf32> to vector<4x128xf32>
    %53 = vector.broadcast %cst_15 : f32 to vector<4x128xf32>
    %54 = arith.select %16, %52, %53 : vector<4x128xi1>, vector<4x128xf32>
    %55 = arith.addf %44, %54 : vector<4x128xf32>
    %cst_16 = arith.constant 0.000000e+00 : f32
    %56 = vector.broadcast %cst_16 : f32 to vector<4x128xf32>
    %57 = arith.select %21, %0, %56 : vector<4x128xi1>, vector<4x128xf32>
    %cst_17 = arith.constant dense<0.000000e+00> : vector<4xf32>
    %58 = vector.multi_reduction <add>, %57, %cst_17 [1] : vector<4x128xf32> to vector<4xf32>
    %59 = vector.shape_cast %58 : vector<4xf32> to vector<4x1xf32>
    %cst_18 = arith.constant 3.125000e-02 : f32
    %60 = vector.broadcast %cst_18 : f32 to vector<4x1xf32>
    %61 = arith.mulf %59, %60 : vector<4x1xf32>
    %cst_19 = arith.constant 0.000000e+00 : f32
    %62 = vector.shape_cast %61 : vector<4x1xf32> to vector<4x1xf32>
    %63 = vector.broadcast %62 : vector<4x1xf32> to vector<4x128xf32>
    %64 = vector.broadcast %cst_19 : f32 to vector<4x128xf32>
    %65 = arith.select %21, %63, %64 : vector<4x128xi1>, vector<4x128xf32>
    %66 = arith.addf %55, %65 : vector<4x128xf32>
    %67 = arith.subf %0, %66 : vector<4x128xf32>
    %68 = arith.mulf %67, %67 : vector<4x128xf32>
    %cst_20 = arith.constant 0.000000e+00 : f32
    %69 = vector.broadcast %cst_20 : f32 to vector<4x128xf32>
    %cst_21 = arith.constant 0.000000e+00 : f32
    %70 = vector.broadcast %cst_21 : f32 to vector<4x128xf32>
    %71 = arith.select %6, %68, %70 : vector<4x128xi1>, vector<4x128xf32>
    %cst_22 = arith.constant dense<0.000000e+00> : vector<4xf32>
    %72 = vector.multi_reduction <add>, %71, %cst_22 [1] : vector<4x128xf32> to vector<4xf32>
    %73 = vector.shape_cast %72 : vector<4xf32> to vector<4x1xf32>
    %cst_23 = arith.constant 3.125000e-02 : f32
    %74 = vector.broadcast %cst_23 : f32 to vector<4x1xf32>
    %75 = arith.mulf %73, %74 : vector<4x1xf32>
    %cst_24 = arith.constant 0.000000e+00 : f32
    %76 = vector.shape_cast %75 : vector<4x1xf32> to vector<4x1xf32>
    %77 = vector.broadcast %76 : vector<4x1xf32> to vector<4x128xf32>
    %78 = vector.broadcast %cst_24 : f32 to vector<4x128xf32>
    %79 = arith.select %6, %77, %78 : vector<4x128xi1>, vector<4x128xf32>
    %80 = arith.addf %69, %79 : vector<4x128xf32>
    %cst_25 = arith.constant 0.000000e+00 : f32
    %81 = vector.broadcast %cst_25 : f32 to vector<4x128xf32>
    %82 = arith.select %11, %68, %81 : vector<4x128xi1>, vector<4x128xf32>
    %cst_26 = arith.constant dense<0.000000e+00> : vector<4xf32>
    %83 = vector.multi_reduction <add>, %82, %cst_26 [1] : vector<4x128xf32> to vector<4xf32>
    %84 = vector.shape_cast %83 : vector<4xf32> to vector<4x1xf32>
    %cst_27 = arith.constant 3.125000e-02 : f32
    %85 = vector.broadcast %cst_27 : f32 to vector<4x1xf32>
    %86 = arith.mulf %84, %85 : vector<4x1xf32>
    %cst_28 = arith.constant 0.000000e+00 : f32
    %87 = vector.shape_cast %86 : vector<4x1xf32> to vector<4x1xf32>
    %88 = vector.broadcast %87 : vector<4x1xf32> to vector<4x128xf32>
    %89 = vector.broadcast %cst_28 : f32 to vector<4x128xf32>
    %90 = arith.select %11, %88, %89 : vector<4x128xi1>, vector<4x128xf32>
    %91 = arith.addf %80, %90 : vector<4x128xf32>
    %cst_29 = arith.constant 0.000000e+00 : f32
    %92 = vector.broadcast %cst_29 : f32 to vector<4x128xf32>
    %93 = arith.select %16, %68, %92 : vector<4x128xi1>, vector<4x128xf32>
    %cst_30 = arith.constant dense<0.000000e+00> : vector<4xf32>
    %94 = vector.multi_reduction <add>, %93, %cst_30 [1] : vector<4x128xf32> to vector<4xf32>
    %95 = vector.shape_cast %94 : vector<4xf32> to vector<4x1xf32>
    %cst_31 = arith.constant 3.125000e-02 : f32
    %96 = vector.broadcast %cst_31 : f32 to vector<4x1xf32>
    %97 = arith.mulf %95, %96 : vector<4x1xf32>
    %cst_32 = arith.constant 0.000000e+00 : f32
    %98 = vector.shape_cast %97 : vector<4x1xf32> to vector<4x1xf32>
    %99 = vector.broadcast %98 : vector<4x1xf32> to vector<4x128xf32>
    %100 = vector.broadcast %cst_32 : f32 to vector<4x128xf32>
    %101 = arith.select %16, %99, %100 : vector<4x128xi1>, vector<4x128xf32>
    %102 = arith.addf %91, %101 : vector<4x128xf32>
    %cst_33 = arith.constant 0.000000e+00 : f32
    %103 = vector.broadcast %cst_33 : f32 to vector<4x128xf32>
    %104 = arith.select %21, %68, %103 : vector<4x128xi1>, vector<4x128xf32>
    %cst_34 = arith.constant dense<0.000000e+00> : vector<4xf32>
    %105 = vector.multi_reduction <add>, %104, %cst_34 [1] : vector<4x128xf32> to vector<4xf32>
    %106 = vector.shape_cast %105 : vector<4xf32> to vector<4x1xf32>
    %cst_35 = arith.constant 3.125000e-02 : f32
    %107 = vector.broadcast %cst_35 : f32 to vector<4x1xf32>
    %108 = arith.mulf %106, %107 : vector<4x1xf32>
    %cst_36 = arith.constant 0.000000e+00 : f32
    %109 = vector.shape_cast %108 : vector<4x1xf32> to vector<4x1xf32>
    %110 = vector.broadcast %109 : vector<4x1xf32> to vector<4x128xf32>
    %111 = vector.broadcast %cst_36 : f32 to vector<4x128xf32>
    %112 = arith.select %21, %110, %111 : vector<4x128xi1>, vector<4x128xf32>
    %113 = arith.addf %102, %112 : vector<4x128xf32>
    %cst_37 = arith.constant 9.99999974E-6 : f32
    %114 = vector.broadcast %cst_37 : f32 to vector<4x128xf32>
    %115 = arith.addf %113, %114 : vector<4x128xf32>
    %116 = math.rsqrt %115 : vector<4x128xf32>
    %117 = arith.mulf %67, %116 : vector<4x128xf32>
    %c0_38 = arith.constant 0 : index
    %c0_39 = arith.constant 0 : index
    %118 = vector.load %arg2[%c0_38, %c0_39] : memref<1x128xf32, #tpu.memory_space<vmem>>, vector<1x128xf32>
    %119 = vector.broadcast %118 : vector<1x128xf32> to vector<4x128xf32>
    %120 = arith.mulf %119, %117 : vector<4x128xf32>
    %c0_40 = arith.constant 0 : index
    %c0_41 = arith.constant 0 : index
    %121 = vector.load %arg3[%c0_40, %c0_41] : memref<1x128xf32, #tpu.memory_space<vmem>>, vector<1x128xf32>
    %122 = vector.broadcast %121 : vector<1x128xf32> to vector<4x128xf32>
    %123 = arith.addf %120, %122 : vector<4x128xf32>
    %c0_42 = arith.constant 0 : index
    %c0_43 = arith.constant 0 : index
    %124 = vector.load %arg4[%c0_42, %c0_43] : memref<4x128xf32, #tpu.memory_space<vmem>>, vector<4x128xf32>
    tpu.vector_store %arg4[%c0_42, %c0_43], %123 {strides = array<i32>} : memref<4x128xf32, #tpu.memory_space<vmem>>, vector<4x128xf32>,
    return
  }
  func.func @transform_0(%arg0: i32) -> (i32, i32) {
    %c0_i32 = arith.constant 0 : i32
    %c0_i32_0 = arith.constant 0 : i32
    return %arg0, %c0_i32 : i32, i32
  }
  func.func @transform_1(%arg0: i32) -> (i32, i32) {
    %c0_i32 = arith.constant 0 : i32
    %c0_i32_0 = arith.constant 0 : i32
    %c0_i32_1 = arith.constant 0 : i32
    return %c0_i32, %c0_i32_0 : i32, i32
  }
  func.func @transform_2(%arg0: i32) -> (i32, i32) {
    %c0_i32 = arith.constant 0 : i32
    %c0_i32_0 = arith.constant 0 : i32
    %c0_i32_1 = arith.constant 0 : i32
    return %c0_i32, %c0_i32_0 : i32, i32
  }
  func.func @transform_3(%arg0: i32) -> (i32, i32) {
    %c0_i32 = arith.constant 0 : i32
    %c0_i32_0 = arith.constant 0 : i32
    return %arg0, %c0_i32 : i32, i32
  }
}

</mosaic_0001>

<bundles_post_ra>
// kernel: tpu_custom_call.1
= control target key start
LH: loop header
LB: loop body
LE: loop exit
PB: predicated region body
PF: predicated region fallthrough
CT: control target
= control target key end

     0   :  { %8 = vsyncpa [#allocation3], 0  ;;  %s334_s0 = inlined_call_operand.hbm [shape: f32[4,128], index: 0, kind: input, shape index: {}]   ;;  %s335_s1 = inlined_call_operand.hbm [shape: f32[1,128], index: 1, kind: input, shape index: {}]   ;;  %s336_s2 = inlined_call_operand.vmem [shape: f32[1,128], index: 2, kind: input, shape index: {}]   ;;  %s337_s3 = inlined_call_operand.hbm [shape: f32[4,128], index: 3, kind: output, shape index: {}]  }
   0x1   :  { %9 = vsyncpa [#allocation6], 0 }
   0x2   :  { %10 = vsyncpa [#allocation4], 0  ;;  %s16_s14 = sshll.u32 %s334_s0, 4  ;;  %s243_s15 = smov [#allocation2]   ;;  %s17_s14 = int_to_ptr.hbm [resolvable:$true] %s16_s14 }
   0x3   :  { %s18_s16 = sshll.u32 %s243_s15, 4  ;;  %s27_s19 = sshll.u32 %s335_s1, 4  ;;  %s19_s16 = int_to_ptr.vmem [resolvable:$true] %s18_s16  ;;  %s28_s19 = int_to_ptr.hbm [resolvable:$true] %s27_s19 }
   0x4   :  { %21 = dma.hbm_to_vmem [thread:$0]  %s17_s14, 64, %s19_s16, [#allocation3]  }
   0x5   :  { %s244_s20 = smov [#allocation5]  }
   0x6   :  { %s29_s21 = sshll.u32 %s244_s20, 4  ;;  %s30_s21 = int_to_ptr.vmem [resolvable:$true] %s29_s21 }
   0x7   :  { %32 = dma.hbm_to_vmem [thread:$0]  %s28_s19, 16, %s30_s21, [#allocation6]  }
   0x8   :  { %237 = dma.done.wait [#allocation3], 64  }
   0x9   :  { %238 = vsyncadd [#allocation3], 4294967232 }
   0xa   :  { %239 = dma.done.wait [#allocation6], 16  }
   0xb   :  { %240 = vsyncadd [#allocation6], 4294967280  ;;  %v44_v0 = vlaneseq  ;;  %vm59_vm4 = vcmask 1043456   ;;  %v43_v3 = vld [vmem:[#allocation2] sm:$0xf]  ;;  %s245_s22 = smov [#allocation7]  }
   0xc   :  { %v161_v60 = vld [vmem:[#allocation5] ss:$0 sm:$0xff]  ;;  %v162_v63 = vld [vmem:[%s336_s2] ss:$0 sm:$0xff]  ;;  %s145_s23 = sshll.u32 %s245_s22, 4  ;;  %s147_s26 = sshll.u32 %s337_s3, 4  ;;  %s146_s23 = int_to_ptr.vmem [resolvable:$true] %s145_s23  ;;  %s148_s26 = int_to_ptr.hbm [resolvable:$true] %s147_s26 }
   0xd   :  { %v272_v1 = vand.u32 127, %v44_v0 }
   0xf   :  { %vm52_vm0 = vcmp.ge.s32.totalorder %v272_v1, 64  ;;  %vm53_vm1 = vcmp.lt.s32.totalorder %v272_v1, 96  ;;  %vm47_vm2 = vcmp.lt.s32.totalorder %v272_v1, 32  ;;  %vm49_vm5 = vcmp.ge.s32.totalorder %v272_v1, 32 }
  0x10   :  { %vm277_vm3 = vmand %vm52_vm0, %vm53_vm1  ;;  %vm50_vm6 = vcmp.lt.s32.totalorder %v272_v1, 64  ;;  %v58_v4 = vsel %vm47_vm2, %v43_v3, 0.0  ;;  %vm55_vm8 = vcmp.ge.s32.totalorder %v272_v1, 96 }
  0x11   :  { %v73_v5 = vsel %vm277_vm3, %v43_v3, 0.0  ;;  %v60_v6 = vsel %vm59_vm4, %v58_v4, 0.0  ;;  %vm289_vm7 = vmand %vm49_vm5, %vm50_vm6  ;;  %v80_v10 = vsel %vm55_vm8, %v43_v3, 0.0 }
  0x12   :  { %v74_v7 = vsel %vm59_vm4, %v73_v5, 0.0  ;;  %61 = vadd.xlane.f32.xlu0 %v60_v6  ;;  %v66_v9 = vsel %vm289_vm7, %v43_v3, 0.0  ;;  %v81_v12 = vsel %vm59_vm4, %v80_v10, 0.0 }
  0x13   :  { %75 = vadd.xlane.f32.xlu1 %v74_v7  ;;  %v67_v11 = vsel %vm59_vm4, %v66_v9, 0.0 }
  0x1a   :  { %68 = vadd.xlane.f32.xlu0 %v67_v11 }
  0x1b   :  { %82 = vadd.xlane.f32.xlu1 %v81_v12 }
  0x85   :  { %v62_v13 = vpop.xlane.xlu0 %61 }
  0x86   :  { %v76_v14 = vpop.xlane.xlu1 %75  ;;  %v63_v15 = vmul.f32 0.03125, %v62_v13 }
  0x87   :  { %v77_v18 = vmul.f32 0.03125, %v76_v14 }
  0x88   :  { %v64_v21 = vsel %vm47_vm2, %v63_v15, 0.0 }
  0x89   :  { %v78_v24 = vsel %vm277_vm3, %v77_v18, 0.0 }
  0x8d   :  { %v69_v16 = vpop.xlane.xlu0 %68 }
  0x8e   :  { %v83_v17 = vpop.xlane.xlu1 %82  ;;  %v70_v19 = vmul.f32 0.03125, %v69_v16 }
  0x8f   :  { %v84_v20 = vmul.f32 0.03125, %v83_v17 }
  0x90   :  { %v71_v22 = vsel %vm289_vm7, %v70_v19, 0.0 }
  0x91   :  { %v72_v23 = vadd.f32 %v71_v22, %v64_v21  ;;  %v85_v25 = vsel %vm55_vm8, %v84_v20, 0.0 }
  0x93   :  { %v79_v26 = vadd.f32 %v78_v24, %v72_v23 }
  0x95   :  { %v86_v27 = vadd.f32 %v85_v25, %v79_v26 }
  0x97   :  { %v87_v28 = vsub.f32 %v43_v3, %v86_v27 }
  0x99   :  { %v88_v29 = vmul.f32 %v87_v28, %v87_v28 }
  0x9b   :  { %v110_v30 = vsel %vm55_vm8, %v88_v29, 0.0  ;;  %v103_v31 = vsel %vm277_vm3, %v88_v29, 0.0  ;;  %v89_v32 = vsel %vm47_vm2, %v88_v29, 0.0  ;;  %v96_v36 = vsel %vm289_vm7, %v88_v29, 0.0 }
  0x9c   :  { %v111_v33 = vsel %vm59_vm4, %v110_v30, 0.0  ;;  %v104_v34 = vsel %vm59_vm4, %v103_v31, 0.0  ;;  %v90_v35 = vsel %vm59_vm4, %v89_v32, 0.0  ;;  %v97_v37 = vsel %vm59_vm4, %v96_v36, 0.0 }
  0x9d   :  { %112 = vadd.xlane.f32.xlu1 %v111_v33  ;;  %105 = vadd.xlane.f32.xlu0 %v104_v34 }
  0x9e   :  { %91 = vadd.xlane.f32.xlu2 %v90_v35 }
  0xa6   :  { %98 = vadd.xlane.f32.xlu2 %v97_v37 }
 0x110   :  { %v106_v39 = vpop.xlane.xlu0 %105  ;;  %v113_v41 = vpop.xlane.xlu1 %112 }
 0x111   :  { %v92_v38 = vpop.xlane.xlu2 %91  ;;  %v107_v43 = vmul.f32 0.03125, %v106_v39  ;;  %v114_v45 = vmul.f32 0.03125, %v113_v41 }
 0x112   :  { %v93_v40 = vmul.f32 0.03125, %v92_v38 }
 0x113   :  { %v108_v49 = vsel %vm277_vm3, %v107_v43, 0.0  ;;  %v115_v51 = vsel %vm55_vm8, %v114_v45, 0.0 }
 0x114   :  { %v94_v46 = vsel %vm47_vm2, %v93_v40, 0.0 }
 0x119   :  { %v99_v42 = vpop.xlane.xlu2 %98 }
 0x11a   :  { %v100_v44 = vmul.f32 0.03125, %v99_v42 }
 0x11c   :  { %v101_v47 = vsel %vm289_vm7, %v100_v44, 0.0 }
 0x11d   :  { %v102_v48 = vadd.f32 %v101_v47, %v94_v46 }
 0x11f   :  { %v109_v50 = vadd.f32 %v108_v49, %v102_v48 }
 0x121   :  { %v116_v52 = vadd.f32 %v115_v51, %v109_v50 }
 0x123   :  { %v117_v53 = vadd.f32 1e-05, %v116_v52 }
 0x125   :  { %163 = vrsqrt.f32 %v117_v53  ;;  %vm124_vm10 = vweird.f32 %v117_v53 }
 0x12b   :  { %v164_v54 = vpop.eup %163 }
 0x12c   :  { %v119_v55 = vmul.f32 %v164_v54, %v117_v53  ;;  %vm125_vm9 = vweird.f32 %v164_v54 }
 0x12d   :  { %vm126_vm11 = vmor %vm124_vm10, %vm125_vm9 }
 0x12e   :  { %v120_v56 = vmul.f32 %v164_v54, %v119_v55 }
 0x130   :  { %v121_v57 = vmul.f32 0.5, %v120_v56 }
 0x132   :  { %v122_v58 = vsub.f32 1.5, %v121_v57 }
 0x134   :  { %v123_v59 = vmul.f32 %v164_v54, %v122_v58 }
 0x136   :  { %v127_v61 = vsel %vm126_vm11, %v164_v54, %v123_v59 }
 0x137   :  { %v128_v62 = vmul.f32 %v127_v61, %v87_v28 }
 0x139   :  { %v133_v0 = vmul.f32 %v161_v60, %v128_v62 }
 0x13b   :  { %v138_v1 = vadd.f32 %v162_v63, %v133_v0 }
 0x13d   :  { %139 = vst [vmem:[#allocation7] sm:$0xf] %v138_v1 }
 0x13e   :  { %150 = dma.vmem_to_hbm [thread:$0]  %s146_s23, 64, %s148_s26, [#allocation4]  }
 0x13f   :  { %241 = dma.done.wait [#allocation4], 64  }
 0x140   :  { %242 = vsyncadd [#allocation4], 4294967232 }
 0x141   :  { %155 = vsyncpa [#allocation3], 1 }
 0x142   :  { %156 = vsyncpa [#allocation6], 1 }
 0x143   :  { %157 = vsyncpa [#allocation4], 1 }

</bundles_post_ra>
